<compile_context>
chip_gen: v7x
topology: tpu7x:2x2x1
jax: 0.10.0
libtpu: 0.0.40
codegen_flags: <defaults>
</compile_context>

<pallas_src>
import functools

import jax
import jax.numpy as jnp
from jax.experimental import pallas as pl
from jax.experimental.pallas import tpu as pltpu

LANE = 128        # TPU lane width; padded width of the in/out feature dims
TM_PREF = 512     # preferred node-row tile   (A_hat tile rows)
TK_PREF = 2048    # preferred reduction tile  (A_hat tile cols)


def _round_up(x, m):
    return ((x + m - 1) // m) * m


def _pad2(x, rows, cols):
    r, c = x.shape
    return jnp.pad(x, ((0, rows - r), (0, cols - c)))


def _vmem_limit_bytes():
    # v5e/v6e: 128 MiB VMEM per core; v7x: 64 MiB. Use ~80% of physical
    # (capped) so the compiler keeps pipelining/scratch headroom on every part.
    try:
        cap = int(pltpu.get_tpu_info().vmem_capacity_bytes)
    except Exception:
        cap = 64 * 1024 * 1024
    return min(int(cap * 0.8), 100 * 1024 * 1024)


# ----------------------------------------------------------------------------
# Layer-1 kernel.  grid = (row_tile, k_tile)
#   acc      = sum_k A_hat[r,k] @ X[k]            (f32 accumulator, k last)
#   hw2[r]   = relu(acc @ W1 + b1) @ W2           (eval-mode dropout = id)
# X / W1 / b1 / W2 are grid-invariant resident VMEM blocks.
# ----------------------------------------------------------------------------
def _gcn_layer1_kernel(a_ref, x_ref, w1_ref, b1_ref, w2_ref, hw2_ref, acc_ref,
                       *, tk):
    k = pl.program_id(1)

    @pl.when(k == 0)
    def _init():
        acc_ref[...] = jnp.zeros_like(acc_ref)

    col0 = pl.multiple_of(k * tk, tk)
    acc_ref[...] += jnp.dot(a_ref[...], x_ref[pl.ds(col0, tk), :],
                            preferred_element_type=jnp.float32)

    @pl.when(k == pl.num_programs(1) - 1)
    def _finalize():
        h = jnp.dot(acc_ref[...].astype(jnp.bfloat16), w1_ref[...],
                    preferred_element_type=jnp.float32)
        h = jnp.maximum(h + b1_ref[...], 0.0)  # GCNConv bias + ReLU
        # TODO(synk): eval-mode forward only; training dropout mask not applied.
        hw2_ref[...] = jnp.dot(h.astype(jnp.bfloat16), w2_ref[...],
                               preferred_element_type=jnp.float32
                               ).astype(hw2_ref.dtype)


# ----------------------------------------------------------------------------
# Layer-2 kernel.  grid = (row_tile, k_tile)
#   out[r] = sum_k A_hat[r,k] @ hw2[k] + b2       (lane-dense 128-wide store)
# hw2 / b2 are grid-invariant resident VMEM blocks.
# ----------------------------------------------------------------------------
def _gcn_layer2_kernel(a_ref, hw2_ref, b2_ref, o_ref, acc_ref, *, tk):
    k = pl.program_id(1)

    @pl.when(k == 0)
    def _init():
        acc_ref[...] = jnp.zeros_like(acc_ref)

    col0 = pl.multiple_of(k * tk, tk)
    acc_ref[...] += jnp.dot(a_ref[...], hw2_ref[pl.ds(col0, tk), :],
                            preferred_element_type=jnp.float32)

    @pl.when(k == pl.num_programs(1) - 1)
    def _finalize():
        o_ref[...] = (acc_ref[...] + b2_ref[...]).astype(o_ref.dtype)


def fused_gcn_forward(a_norm, x, w1, b1, w2, b2):
    n, f_in = x.shape
    h_dim = w1.shape[1]
    f_out = w2.shape[1]
    assert f_in <= LANE and f_out <= LANE, "kernel assumes narrow in/out feature dims"

    n128 = _round_up(max(n, LANE), LANE)
    tm = min(TM_PREF, n128)            # tiles never collapse below min(pref, N)
    tk = min(TK_PREF, n128)
    n_row_pad = _round_up(n128, tm)    # A rows padded up to a multiple of tm
    n_col_pad = _round_up(n128, tk)    # A cols padded up to a multiple of tk

    h_pad = _round_up(h_dim, LANE)
    feat_pad = LANE                    # common padded in/out feature width

    vmem_limit = _vmem_limit_bytes()
    est_vmem = (
        2 * tm * tk * 2                                  # A tile, 2x buffered bf16
        + 2 * n_col_pad * feat_pad * 2                   # resident X / hw2 slab
        + tm * feat_pad * 4                              # f32 accumulator
        + 2 * tm * feat_pad * 4                          # output tile, 2x buffered
        + 2 * (feat_pad * h_pad + h_pad * feat_pad) * 2  # W1 + W2 (bf16, 2x)
        + 2 * (h_pad + feat_pad) * 4                     # b1 + b2
        + (2 << 20)                                      # compiler scratch slack
    )
    # TODO(synk): when the resident X / hw2 slab no longer fits (very large N),
    # stream them by k-tile or switch to a sparse segment-sum formulation.
    assert est_vmem <= vmem_limit, (est_vmem, vmem_limit)

    # TODO(synk): int8 (v5e/v6e) / fp8-e4m3 (v7x) A_hat with per-row scales
    # would halve the dominant HBM stream again.
    a_p = _pad2(a_norm, n_row_pad, n_col_pad).astype(jnp.bfloat16)
    x_p = _pad2(x, n_col_pad, feat_pad).astype(jnp.bfloat16)
    w1_p = _pad2(w1, feat_pad, h_pad).astype(jnp.bfloat16)
    b1_p = _pad2(b1.reshape(1, -1), 1, h_pad).astype(jnp.float32)
    w2_p = _pad2(w2, h_pad, feat_pad).astype(jnp.bfloat16)
    b2_p = _pad2(b2.reshape(1, -1), 1, feat_pad).astype(jnp.float32)

    grid = (n_row_pad // tm, n_col_pad // tk)
    compiler_params = pltpu.CompilerParams(
        # Row tiles are independent -> megacore-sharded across both v7x TCs;
        # the A-column reduction axis stays sequential for the accumulator.
        dimension_semantics=("parallel", "arbitrary"),
        vmem_limit_bytes=vmem_limit,
    )

    # ---- layer 1: hw2 = relu((A_hat @ X) @ W1 + b1) @ W2 --------------------
    hw2 = pl.pallas_call(
        functools.partial(_gcn_layer1_kernel, tk=tk),
        out_shape=jax.ShapeDtypeStruct((n_row_pad, feat_pad), jnp.bfloat16),
        grid_spec=pltpu.PrefetchScalarGridSpec(
            num_scalar_prefetch=0,
            grid=grid,
            in_specs=[
                pl.BlockSpec((tm, tk), lambda r, k: (r, k)),               # A_hat
                pl.BlockSpec((n_col_pad, feat_pad), lambda r, k: (0, 0)),  # X (resident)
                pl.BlockSpec((feat_pad, h_pad), lambda r, k: (0, 0)),      # W1 (resident)
                pl.BlockSpec((1, h_pad), lambda r, k: (0, 0)),             # b1
                pl.BlockSpec((h_pad, feat_pad), lambda r, k: (0, 0)),      # W2 (resident)
            ],
            out_specs=pl.BlockSpec((tm, feat_pad), lambda r, k: (r, 0)),
            scratch_shapes=[pltpu.VMEM((tm, feat_pad), jnp.float32)],
        ),
        compiler_params=compiler_params,
    )(a_p, x_p, w1_p, b1_p, w2_p)

    # Match hw2's row count to A_hat's zero-padded column count (padding rows
    # of hw2 only multiply zero columns of A_hat, so zeros are fine).
    if n_col_pad > n_row_pad:
        hw2 = jnp.pad(hw2, ((0, n_col_pad - n_row_pad), (0, 0)))
    elif n_col_pad < n_row_pad:
        hw2 = hw2[:n_col_pad]

    # ---- layer 2: out = A_hat @ hw2 + b2 ------------------------------------
    out_p = pl.pallas_call(
        functools.partial(_gcn_layer2_kernel, tk=tk),
        out_shape=jax.ShapeDtypeStruct((n_row_pad, feat_pad), jnp.float32),
        grid_spec=pltpu.PrefetchScalarGridSpec(
            num_scalar_prefetch=0,
            grid=grid,
            in_specs=[
                pl.BlockSpec((tm, tk), lambda r, k: (r, k)),               # A_hat
                pl.BlockSpec((n_col_pad, feat_pad), lambda r, k: (0, 0)),  # hw2 (resident)
                pl.BlockSpec((1, feat_pad), lambda r, k: (0, 0)),          # b2
            ],
            out_specs=pl.BlockSpec((tm, feat_pad), lambda r, k: (r, 0)),
            scratch_shapes=[pltpu.VMEM((tm, feat_pad), jnp.float32)],
        ),
        compiler_params=compiler_params,
    )(a_p, hw2, b2_p)

    return out_p[:n, 0]  # column 0 of the lane-dense slab is the real output


# ----------------------------------------------------------------------------
# GCN normalization (A + I, symmetric deg^{-1/2} scaling) in plain JAX (prep)
# ----------------------------------------------------------------------------
def normalized_adjacency(edge_index, num_nodes):
    # TODO(synk): duplicate edges are deduplicated (.set) and edge weights are
    # not supported; PyG's scatter-add would accumulate multi-edges.
    src, dst = edge_index[0], edge_index[1]
    a = jnp.zeros((num_nodes, num_nodes), jnp.float32)
    a = a.at[dst, src].set(1.0)                       # message flows src -> dst
    a = a + jnp.eye(num_nodes, dtype=jnp.float32)     # add self-loops
    deg = jnp.sum(a, axis=1)
    d_inv_sqrt = jnp.where(deg > 0, 1.0 / jnp.sqrt(deg), 0.0)
    return d_inv_sqrt[:, None] * a * d_inv_sqrt[None, :]


# ----------------------------------------------------------------------------
# Deterministic parameter init (GCNConv: glorot weight, zero bias)
# ----------------------------------------------------------------------------
def init_params(num_node_features, hidden_channels):
    key = jax.random.PRNGKey(0)
    k1, k2 = jax.random.split(key)

    def glorot(k, fan_in, fan_out):
        lim = jnp.sqrt(6.0 / (fan_in + fan_out))
        return jax.random.uniform(
            k, (fan_in, fan_out), jnp.float32, minval=-lim, maxval=lim
        )

    return {
        "w1": glorot(k1, num_node_features, hidden_channels),
        "b1": jnp.zeros((hidden_channels,), jnp.float32),
        "w2": glorot(k2, hidden_channels, 1),
        "b2": jnp.zeros((1,), jnp.float32),
    }


# ----------------------------------------------------------------------------
# BaseGNN.forward
# ----------------------------------------------------------------------------
@jax.jit
def _dense_forward(x, edge_index, w1, b1, w2, b2):
    a_norm = normalized_adjacency(edge_index, x.shape[0])
    return fused_gcn_forward(a_norm, x, w1, b1, w2, b2)


def base_gnn_forward(x, edge_index, params):
    out = _dense_forward(x, edge_index, params["w1"], params["b1"],
                         params["w2"], params["b2"])
    # generator_mask = data.x[:, 0] == 1 ; x[mask].squeeze(1)
    # (dynamic-shape boolean gather is kept outside jit; a fully jitted path
    #  would need a fixed-size jnp.where-based gather instead.)
    generator_mask = x[:, 0] == 1
    return out[generator_mask]


if __name__ == "__main__":
    num_nodes = 16
    num_node_features = 4
    hidden_channels = 32

    key = jax.random.PRNGKey(0)
    kx, _ = jax.random.split(key)

    # Node features; column 0 is the generator indicator (exactly 0/1 values).
    x = jax.random.normal(kx, (num_nodes, num_node_features), jnp.float32)
    gen_flags = jnp.zeros((num_nodes,), jnp.float32).at[
        jnp.array([0, 3, 7, 12])
    ].set(1.0)
    x = x.at[:, 0].set(gen_flags)

    # Undirected ring graph, both edge directions (PyG edge_index [2, E]).
    src = jnp.arange(num_nodes, dtype=jnp.int32)
    dst = (src + 1) % num_nodes
    edge_index = jnp.stack(
        [jnp.concatenate([src, dst]), jnp.concatenate([dst, src])], axis=0
    )

    params = init_params(num_node_features, hidden_channels)

    generator_outputs = base_gnn_forward(x, edge_index, params)
    jax.block_until_ready(generator_outputs)

    assert generator_outputs.shape == (4,), generator_outputs.shape
    print("KERNEL_OK")
</pallas_src>

<mosaic_0001>
module attributes {stable_mosaic.version = 11 : i64} {
  func.func @_gcn_layer2_kernel(%arg0: i32, %arg1: i32, %arg2: memref<128x128xbf16, #tpu.memory_space<vmem>>, %arg3: memref<128x128xbf16, #tpu.memory_space<vmem>>, %arg4: memref<1x128xf32, #tpu.memory_space<vmem>>, %arg5: memref<128x128xf32, #tpu.memory_space<vmem>>, %arg6: memref<128x128xf32, #tpu.memory_space<vmem>>) attributes {dimension_semantics = [#tpu.dimension_semantics<parallel>, #tpu.dimension_semantics<arbitrary>], iteration_bounds = array<i64: 1, 1>, scalar_prefetch = 0 : i64, scratch_operands = 1 : i64, tpu.core_type = #tpu.core_type<tc>, window_params = [{transform_indices = @transform_0, window_bounds = array<i64: 128, 128>}, {pipeline_mode = #tpu.pipeline_mode<synchronous>, transform_indices = @transform_1, window_bounds = array<i64: 128, 128>}, {pipeline_mode = #tpu.pipeline_mode<synchronous>, transform_indices = @transform_2, window_bounds = array<i64: 1, 128>}, {transform_indices = @transform_3, window_bounds = array<i64: 128, 128>}]} {
    %c0_i32 = arith.constant 0 : i32
    %0 = arith.cmpi eq, %arg1, %c0_i32 : i32
    %1 = arith.extui %0 : i1 to i32
    %c0_i32_0 = arith.constant 0 : i32
    %2 = arith.cmpi ne, %1, %c0_i32_0 : i32
    scf.if %2 {
      %cst_9 = arith.constant 0.000000e+00 : f32
      %15 = vector.broadcast %cst_9 : f32 to vector<128x128xf32>
      %c0_10 = arith.constant 0 : index
      %c0_11 = arith.constant 0 : index
      %16 = vector.load %arg6[%c0_10, %c0_11] : memref<128x128xf32, #tpu.memory_space<vmem>>, vector<128x128xf32>
      tpu.vector_store %arg6[%c0_10, %c0_11], %15 {strides = array<i32>} : memref<128x128xf32, #tpu.memory_space<vmem>>, vector<128x128xf32>,
    } else {
    }
    %c128_i32 = arith.constant 128 : i32
    %3 = arith.muli %arg1, %c128_i32 : i32
    %4 = tpu.assume_multiple %3, 128 : i32
    %c0 = arith.constant 0 : index
    %c0_1 = arith.constant 0 : index
    %5 = vector.load %arg6[%c0, %c0_1] : memref<128x128xf32, #tpu.memory_space<vmem>>, vector<128x128xf32>
    %c0_2 = arith.constant 0 : index
    %c0_3 = arith.constant 0 : index
    %6 = vector.load %arg2[%c0_2, %c0_3] : memref<128x128xbf16, #tpu.memory_space<vmem>>, vector<128x128xbf16>
    %7 = arith.index_cast %4 : i32 to index
    %c0_4 = arith.constant 0 : index
    %8 = vector.load %arg3[%7, %c0_4] : memref<128x128xbf16, #tpu.memory_space<vmem>>, vector<128x128xbf16>
    %cst = arith.constant dense<0.000000e+00> : vector<128x128xf32>
    %9 = tpu.matmul %6, %8, %cst {dimension_numbers = #tpu.dot_dimension_numbers<[1], [0], [0], [1], [0, 0, 1, 1], [], []>} : vector<128x128xbf16>, vector<128x128xbf16>, vector<128x128xf32> -> vector<128x128xf32>
    %10 = arith.addf %5, %9 : vector<128x128xf32>
    %c0_5 = arith.constant 0 : index
    %c0_6 = arith.constant 0 : index
    %11 = vector.load %arg6[%c0_5, %c0_6] : memref<128x128xf32, #tpu.memory_space<vmem>>, vector<128x128xf32>
    tpu.vector_store %arg6[%c0_5, %c0_6], %10 {strides = array<i32>} : memref<128x128xf32, #tpu.memory_space<vmem>>, vector<128x128xf32>,
    %c0_i32_7 = arith.constant 0 : i32
    %12 = arith.cmpi eq, %arg1, %c0_i32_7 : i32
    %13 = arith.extui %12 : i1 to i32
    %c0_i32_8 = arith.constant 0 : i32
    %14 = arith.cmpi ne, %13, %c0_i32_8 : i32
    scf.if %14 {
      %c0_9 = arith.constant 0 : index
      %c0_10 = arith.constant 0 : index
      %15 = vector.load %arg6[%c0_9, %c0_10] : memref<128x128xf32, #tpu.memory_space<vmem>>, vector<128x128xf32>
      %c0_11 = arith.constant 0 : index
      %c0_12 = arith.constant 0 : index
      %16 = vector.load %arg4[%c0_11, %c0_12] : memref<1x128xf32, #tpu.memory_space<vmem>>, vector<1x128xf32>
      %17 = vector.broadcast %16 : vector<1x128xf32> to vector<128x128xf32>
      %18 = arith.addf %15, %17 : vector<128x128xf32>
      %c0_13 = arith.constant 0 : index
      %c0_14 = arith.constant 0 : index
      %19 = vector.load %arg5[%c0_13, %c0_14] : memref<128x128xf32, #tpu.memory_space<vmem>>, vector<128x128xf32>
      tpu.vector_store %arg5[%c0_13, %c0_14], %18 {strides = array<i32>} : memref<128x128xf32, #tpu.memory_space<vmem>>, vector<128x128xf32>,
    } else {
    }
    return
  }
  func.func @transform_0(%arg0: i32, %arg1: i32) -> (i32, i32) {
    %c0_i32 = arith.constant 0 : i32
    return %arg0, %arg1 : i32, i32
  }
  func.func @transform_1(%arg0: i32, %arg1: i32) -> (i32, i32) {
    %c0_i32 = arith.constant 0 : i32
    %c0_i32_0 = arith.constant 0 : i32
    %c0_i32_1 = arith.constant 0 : i32
    return %c0_i32, %c0_i32_0 : i32, i32
  }
  func.func @transform_2(%arg0: i32, %arg1: i32) -> (i32, i32) {
    %c0_i32 = arith.constant 0 : i32
    %c0_i32_0 = arith.constant 0 : i32
    %c0_i32_1 = arith.constant 0 : i32
    return %c0_i32, %c0_i32_0 : i32, i32
  }
  func.func @transform_3(%arg0: i32, %arg1: i32) -> (i32, i32) {
    %c0_i32 = arith.constant 0 : i32
    %c0_i32_0 = arith.constant 0 : i32
    return %arg0, %c0_i32 : i32, i32
  }
}

module attributes {stable_mosaic.version = 11 : i64} {
  func.func @_gcn_layer1_kernel(%arg0: i32, %arg1: i32, %arg2: memref<128x128xbf16, #tpu.memory_space<vmem>>, %arg3: memref<128x128xbf16, #tpu.memory_space<vmem>>, %arg4: memref<128x128xbf16, #tpu.memory_space<vmem>>, %arg5: memref<1x128xf32, #tpu.memory_space<vmem>>, %arg6: memref<128x128xbf16, #tpu.memory_space<vmem>>, %arg7: memref<128x128xbf16, #tpu.memory_space<vmem>>, %arg8: memref<128x128xf32, #tpu.memory_space<vmem>>) attributes {dimension_semantics = [#tpu.dimension_semantics<parallel>, #tpu.dimension_semantics<arbitrary>], iteration_bounds = array<i64: 1, 1>, scalar_prefetch = 0 : i64, scratch_operands = 1 : i64, tpu.core_type = #tpu.core_type<tc>, window_params = [{transform_indices = @transform_0, window_bounds = array<i64: 128, 128>}, {pipeline_mode = #tpu.pipeline_mode<synchronous>, transform_indices = @transform_1, window_bounds = array<i64: 128, 128>}, {pipeline_mode = #tpu.pipeline_mode<synchronous>, transform_indices = @transform_2, window_bounds = array<i64: 128, 128>}, {pipeline_mode = #tpu.pipeline_mode<synchronous>, transform_indices = @transform_3, window_bounds = array<i64: 1, 128>}, {pipeline_mode = #tpu.pipeline_mode<synchronous>, transform_indices = @transform_4, window_bounds = array<i64: 128, 128>}, {transform_indices = @transform_5, window_bounds = array<i64: 128, 128>}]} {
    %c0_i32 = arith.constant 0 : i32
    %0 = arith.cmpi eq, %arg1, %c0_i32 : i32
    %1 = arith.extui %0 : i1 to i32
    %c0_i32_0 = arith.constant 0 : i32
    %2 = arith.cmpi ne, %1, %c0_i32_0 : i32
    scf.if %2 {
      %cst_9 = arith.constant 0.000000e+00 : f32
      %15 = vector.broadcast %cst_9 : f32 to vector<128x128xf32>
      %c0_10 = arith.constant 0 : index
      %c0_11 = arith.constant 0 : index
      %16 = vector.load %arg8[%c0_10, %c0_11] : memref<128x128xf32, #tpu.memory_space<vmem>>, vector<128x128xf32>
      tpu.vector_store %arg8[%c0_10, %c0_11], %15 {strides = array<i32>} : memref<128x128xf32, #tpu.memory_space<vmem>>, vector<128x128xf32>,
    } else {
    }
    %c128_i32 = arith.constant 128 : i32
    %3 = arith.muli %arg1, %c128_i32 : i32
    %4 = tpu.assume_multiple %3, 128 : i32
    %c0 = arith.constant 0 : index
    %c0_1 = arith.constant 0 : index
    %5 = vector.load %arg8[%c0, %c0_1] : memref<128x128xf32, #tpu.memory_space<vmem>>, vector<128x128xf32>
    %c0_2 = arith.constant 0 : index
    %c0_3 = arith.constant 0 : index
    %6 = vector.load %arg2[%c0_2, %c0_3] : memref<128x128xbf16, #tpu.memory_space<vmem>>, vector<128x128xbf16>
    %7 = arith.index_cast %4 : i32 to index
    %c0_4 = arith.constant 0 : index
    %8 = vector.load %arg3[%7, %c0_4] : memref<128x128xbf16, #tpu.memory_space<vmem>>, vector<128x128xbf16>
    %cst = arith.constant dense<0.000000e+00> : vector<128x128xf32>
    %9 = tpu.matmul %6, %8, %cst {dimension_numbers = #tpu.dot_dimension_numbers<[1], [0], [0], [1], [0, 0, 1, 1], [], []>} : vector<128x128xbf16>, vector<128x128xbf16>, vector<128x128xf32> -> vector<128x128xf32>
    %10 = arith.addf %5, %9 : vector<128x128xf32>
    %c0_5 = arith.constant 0 : index
    %c0_6 = arith.constant 0 : index
    %11 = vector.load %arg8[%c0_5, %c0_6] : memref<128x128xf32, #tpu.memory_space<vmem>>, vector<128x128xf32>
    tpu.vector_store %arg8[%c0_5, %c0_6], %10 {strides = array<i32>} : memref<128x128xf32, #tpu.memory_space<vmem>>, vector<128x128xf32>,
    %c0_i32_7 = arith.constant 0 : i32
    %12 = arith.cmpi eq, %arg1, %c0_i32_7 : i32
    %13 = arith.extui %12 : i1 to i32
    %c0_i32_8 = arith.constant 0 : i32
    %14 = arith.cmpi ne, %13, %c0_i32_8 : i32
    scf.if %14 {
      %c0_9 = arith.constant 0 : index
      %c0_10 = arith.constant 0 : index
      %15 = vector.load %arg8[%c0_9, %c0_10] : memref<128x128xf32, #tpu.memory_space<vmem>>, vector<128x128xf32>
      %16 = arith.truncf %15 : vector<128x128xf32> to vector<128x128xbf16>
      %c0_11 = arith.constant 0 : index
      %c0_12 = arith.constant 0 : index
      %17 = vector.load %arg4[%c0_11, %c0_12] : memref<128x128xbf16, #tpu.memory_space<vmem>>, vector<128x128xbf16>
      %cst_13 = arith.constant dense<0.000000e+00> : vector<128x128xf32>
      %18 = tpu.matmul %16, %17, %cst_13 {dimension_numbers = #tpu.dot_dimension_numbers<[1], [0], [0], [1], [0, 0, 1, 1], [], []>} : vector<128x128xbf16>, vector<128x128xbf16>, vector<128x128xf32> -> vector<128x128xf32>
      %c0_14 = arith.constant 0 : index
      %c0_15 = arith.constant 0 : index
      %19 = vector.load %arg5[%c0_14, %c0_15] : memref<1x128xf32, #tpu.memory_space<vmem>>, vector<1x128xf32>
      %20 = vector.broadcast %19 : vector<1x128xf32> to vector<128x128xf32>
      %21 = arith.addf %18, %20 : vector<128x128xf32>
      %cst_16 = arith.constant 0.000000e+00 : f32
      %22 = vector.broadcast %cst_16 : f32 to vector<128x128xf32>
      %23 = arith.maximumf %21, %22 : vector<128x128xf32>
      %24 = arith.truncf %23 : vector<128x128xf32> to vector<128x128xbf16>
      %c0_17 = arith.constant 0 : index
      %c0_18 = arith.constant 0 : index
      %25 = vector.load %arg6[%c0_17, %c0_18] : memref<128x128xbf16, #tpu.memory_space<vmem>>, vector<128x128xbf16>
      %cst_19 = arith.constant dense<0.000000e+00> : vector<128x128xf32>
      %26 = tpu.matmul %24, %25, %cst_19 {dimension_numbers = #tpu.dot_dimension_numbers<[1], [0], [0], [1], [0, 0, 1, 1], [], []>} : vector<128x128xbf16>, vector<128x128xbf16>, vector<128x128xf32> -> vector<128x128xf32>
      %27 = arith.truncf %26 : vector<128x128xf32> to vector<128x128xbf16>
      %c0_20 = arith.constant 0 : index
      %c0_21 = arith.constant 0 : index
      %28 = vector.load %arg7[%c0_20, %c0_21] : memref<128x128xbf16, #tpu.memory_space<vmem>>, vector<128x128xbf16>
      tpu.vector_store %arg7[%c0_20, %c0_21], %27 {strides = array<i32>} : memref<128x128xbf16, #tpu.memory_space<vmem>>, vector<128x128xbf16>,
    } else {
    }
    return
  }
  func.func @transform_0(%arg0: i32, %arg1: i32) -> (i32, i32) {
    %c0_i32 = arith.constant 0 : i32
    return %arg0, %arg1 : i32, i32
  }
  func.func @transform_1(%arg0: i32, %arg1: i32) -> (i32, i32) {
    %c0_i32 = arith.constant 0 : i32
    %c0_i32_0 = arith.constant 0 : i32
    %c0_i32_1 = arith.constant 0 : i32
    return %c0_i32, %c0_i32_0 : i32, i32
  }
  func.func @transform_2(%arg0: i32, %arg1: i32) -> (i32, i32) {
    %c0_i32 = arith.constant 0 : i32
    %c0_i32_0 = arith.constant 0 : i32
    %c0_i32_1 = arith.constant 0 : i32
    return %c0_i32, %c0_i32_0 : i32, i32
  }
  func.func @transform_3(%arg0: i32, %arg1: i32) -> (i32, i32) {
    %c0_i32 = arith.constant 0 : i32
    %c0_i32_0 = arith.constant 0 : i32
    %c0_i32_1 = arith.constant 0 : i32
    return %c0_i32, %c0_i32_0 : i32, i32
  }
  func.func @transform_4(%arg0: i32, %arg1: i32) -> (i32, i32) {
    %c0_i32 = arith.constant 0 : i32
    %c0_i32_0 = arith.constant 0 : i32
    %c0_i32_1 = arith.constant 0 : i32
    return %c0_i32, %c0_i32_0 : i32, i32
  }
  func.func @transform_5(%arg0: i32, %arg1: i32) -> (i32, i32) {
    %c0_i32 = arith.constant 0 : i32
    %c0_i32_0 = arith.constant 0 : i32
    return %arg0, %c0_i32 : i32, i32
  }
}

</mosaic_0001>

<bundles_post_ra>
// kernel: _dense_forward.3
= control target key start
LH: loop header
LB: loop body
LE: loop exit
PB: predicated region body
PF: predicated region fallthrough
CT: control target
= control target key end

     0   :  { %s593_s1 = inlined_call_operand.vmem [shape: bf16[128,128], index: 1, kind: input, shape index: {}]   ;;  %s594_s0 = inlined_call_operand.vmem [shape: bf16[128,128], index: 0, kind: input, shape index: {}]   ;;  %s595_s2 = inlined_call_operand.vmem [shape: f32[1,128], index: 2, kind: input, shape index: {}]   ;;  %s596_s3 = inlined_call_operand.vmem [shape: f32[128,128], index: 3, kind: output, shape index: {}]  }
   0x1   :  { %v458_v0 = vld [vmem:[%s593_s1] sm:$0xff]   ;;  %v459_v1 = vld [vmem:[%s593_s1 + $0x8] sm:$0xff]   ;;  %v460_v2 = vld [vmem:[%s593_s1 + $0x10] sm:$0xff]  }
   0x2   :  { %410 = vmatprep.subr.bf16.mxu0 %v458_v0  ;;  %442 = vmatprep.subr.bf16.mxu1 %v458_v0  ;;  %v461_v3 = vld [vmem:[%s593_s1 + $0x18] sm:$0xff]   ;;  %v466_v4 = vld [vmem:[%s594_s0] sm:$0xff]   ;;  %v463_v7 = vld [vmem:[%s593_s1 + $0x28] sm:$0xff]  }
   0x3   :  { %411 = vmatpush3.bf16.msra.mxu0 %v458_v0  ;;  %450 = vmatpush3.bf16.msra.mxu1 %v458_v0  ;;  %v467_v5 = vld [vmem:[%s594_s0 + $0x20] sm:$0xff]   ;;  %v464_v8 = vld [vmem:[%s593_s1 + $0x30] sm:$0xff]   ;;  %v465_v9 = vld [vmem:[%s593_s1 + $0x38] sm:$0xff]  }
   0x4   :  { %412 = vmatprep.subr.bf16.mxu0 %v459_v1  ;;  %443 = vmatprep.subr.bf16.mxu1 %v459_v1  ;;  %v462_v6 = vld [vmem:[%s593_s1 + $0x20] sm:$0xff]   ;;  %v468_v10 = vld [vmem:[%s594_s0 + $0x8] sm:$0xff]   ;;  %v470_v12 = vld [vmem:[%s594_s0 + $0x10] sm:$0xff]  }
   0x5   :  { %426 = vmatprep.mubr.bf16.mxu0 %v466_v4  ;;  %434 = vmatprep.mubr.bf16.mxu1 %v467_v5  ;;  %v469_v11 = vld [vmem:[%s594_s0 + $0x28] sm:$0xff]   ;;  %v471_v13 = vld [vmem:[%s594_s0 + $0x30] sm:$0xff]   ;;  %v472_v14 = vld [vmem:[%s594_s0 + $0x18] sm:$0xff]  }
   0x6   :  { %v473_v15 = vld [vmem:[%s594_s0 + $0x38] sm:$0xff]   ;;  %v393_v16 = vld [vmem:[%s595_s2] ss:$0 sm:$0xff] }
   0x7   :  { %413 = vmatpush3.bf16.msra.mxu0 %v459_v1  ;;  %451 = vmatpush3.bf16.msra.mxu1 %v459_v1 }
   0x8   :  { %414 = vmatprep.subr.bf16.mxu0 %v460_v2  ;;  %444 = vmatprep.subr.bf16.mxu1 %v460_v2 }
   0xb   :  { %415 = vmatpush3.bf16.msra.mxu0 %v460_v2  ;;  %452 = vmatpush3.bf16.msra.mxu1 %v460_v2 }
   0xc   :  { %416 = vmatprep.subr.bf16.mxu0 %v461_v3  ;;  %445 = vmatprep.subr.bf16.mxu1 %v461_v3 }
   0xf   :  { %417 = vmatpush3.bf16.msra.mxu0 %v461_v3  ;;  %453 = vmatpush3.bf16.msra.mxu1 %v461_v3 }
  0x10   :  { %418 = vmatprep.subr.bf16.mxu0 %v462_v6  ;;  %446 = vmatprep.subr.bf16.mxu1 %v462_v6 }
  0x13   :  { %419 = vmatpush3.bf16.msra.mxu0 %v462_v6  ;;  %454 = vmatpush3.bf16.msra.mxu1 %v462_v6 }
  0x14   :  { %420 = vmatprep.subr.bf16.mxu0 %v463_v7  ;;  %447 = vmatprep.subr.bf16.mxu1 %v463_v7 }
  0x17   :  { %421 = vmatpush3.bf16.msra.mxu0 %v463_v7  ;;  %455 = vmatpush3.bf16.msra.mxu1 %v463_v7 }
  0x18   :  { %422 = vmatprep.subr.bf16.mxu0 %v464_v8  ;;  %448 = vmatprep.subr.bf16.mxu1 %v464_v8 }
  0x1b   :  { %423 = vmatpush3.bf16.msra.mxu0 %v464_v8  ;;  %456 = vmatpush3.bf16.msra.mxu1 %v464_v8 }
  0x1c   :  { %424 = vmatprep.subr.bf16.mxu0 %v465_v9  ;;  %449 = vmatprep.subr.bf16.mxu1 %v465_v9 }
  0x1f   :  { %425 = vmatpush3.bf16.msra.mxu0 %v465_v9  ;;  %457 = vmatpush3.bf16.msra.mxu1 %v465_v9 }
  0x22   :  { %427 = vmatmul.mubr.bf16.vlgmr.msra.gmra.mrb[0].mxu0 %v468_v10  ;;  %435 = vmatmul.mubr.bf16.vlgmr.msra.gmra.mrb[0].mxu1 %v469_v11 }
  0x23   :  { %430 = vmatprep.mubr.bf16.mxu0 %v470_v12  ;;  %438 = vmatprep.mubr.bf16.mxu1 %v471_v13 }
  0x2a   :  { %431 = vmatmul.mubr.bf16.gmra.mrb[4].mxu0 %v472_v14  ;;  %439 = vmatmul.mubr.bf16.gmra.mrb[4].mxu1 %v473_v15 }
  0xf5   :  { %v428_v17 = vpop.f32.mrb[0].mxu0  ;;  %v436_v18 = vpop.f32.mrb[0].mxu1 }
  0xf6   :  { %v341_v19 = vadd.f32 %v428_v17, %v393_v16  ;;  %v349_v20 = vadd.f32 %v436_v18, %v393_v16  ;;  %v218_v21 = vpop.f32.mrb[1].mxu0  ;;  %v250_v22 = vpop.f32.mrb[1].mxu1 }
  0xf7   :  { %v339_v23 = vadd.f32 %v393_v16, %v218_v21  ;;  %v347_v24 = vadd.f32 %v393_v16, %v250_v22  ;;  %v429_v25 = vpop.f32.mrb[2].mxu0  ;;  %v437_v26 = vpop.f32.mrb[2].mxu1 }
  0xf8   :  { %357 = vst [vmem:[%s596_s3 + $0x10] sm:$0xff] %v341_v19  ;;  %365 = vst [vmem:[%s596_s3 + $0x50] sm:$0xff] %v349_v20  ;;  %v342_v27 = vadd.f32 %v429_v25, %v393_v16  ;;  %v350_v28 = vadd.f32 %v437_v26, %v393_v16  ;;  %v221_v29 = vpop.f32.mrb[3].mxu0  ;;  %v253_v30 = vpop.f32.mrb[3].mxu1 }
  0xf9   :  { %355 = vst [vmem:[%s596_s3] sm:$0xff] %v339_v23  ;;  %363 = vst [vmem:[%s596_s3 + $0x40] sm:$0xff] %v347_v24  ;;  %v340_v31 = vadd.f32 %v393_v16, %v221_v29  ;;  %v348_v32 = vadd.f32 %v393_v16, %v253_v30 }
  0xfa   :  { %358 = vst [vmem:[%s596_s3 + $0x18] sm:$0xff] %v342_v27  ;;  %366 = vst [vmem:[%s596_s3 + $0x58] sm:$0xff] %v350_v28 }
  0xfb   :  { %356 = vst [vmem:[%s596_s3 + $0x8] sm:$0xff] %v340_v31  ;;  %364 = vst [vmem:[%s596_s3 + $0x48] sm:$0xff] %v348_v32 }
  0xfd   :  { %v432_v33 = vpop.f32.mrb[4].mxu0  ;;  %v440_v34 = vpop.f32.mrb[4].mxu1 }
  0xfe   :  { %v345_v35 = vadd.f32 %v432_v33, %v393_v16  ;;  %v353_v36 = vadd.f32 %v440_v34, %v393_v16  ;;  %v234_v37 = vpop.f32.mrb[5].mxu0  ;;  %v266_v38 = vpop.f32.mrb[5].mxu1 }
  0xff   :  { %v343_v39 = vadd.f32 %v393_v16, %v234_v37  ;;  %v351_v40 = vadd.f32 %v393_v16, %v266_v38  ;;  %v433_v41 = vpop.f32.mrb[6].mxu0  ;;  %v441_v42 = vpop.f32.mrb[6].mxu1 }
 0x100   :  { %361 = vst [vmem:[%s596_s3 + $0x30] sm:$0xff] %v345_v35  ;;  %369 = vst [vmem:[%s596_s3 + $0x70] sm:$0xff] %v353_v36  ;;  %v346_v43 = vadd.f32 %v433_v41, %v393_v16  ;;  %v354_v44 = vadd.f32 %v441_v42, %v393_v16  ;;  %v237_v45 = vpop.f32.mrb[7].mxu0  ;;  %v269_v46 = vpop.f32.mrb[7].mxu1 }
 0x101   :  { %359 = vst [vmem:[%s596_s3 + $0x20] sm:$0xff] %v343_v39  ;;  %367 = vst [vmem:[%s596_s3 + $0x60] sm:$0xff] %v351_v40  ;;  %v344_v47 = vadd.f32 %v393_v16, %v237_v45  ;;  %v352_v48 = vadd.f32 %v393_v16, %v269_v46 }
 0x102   :  { %362 = vst [vmem:[%s596_s3 + $0x38] sm:$0xff] %v346_v43  ;;  %370 = vst [vmem:[%s596_s3 + $0x78] sm:$0xff] %v354_v44 }
 0x103   :  { %360 = vst [vmem:[%s596_s3 + $0x28] sm:$0xff] %v344_v47  ;;  %368 = vst [vmem:[%s596_s3 + $0x68] sm:$0xff] %v352_v48 }

// kernel: _dense_forward.2
= control target key start
LH: loop header
LB: loop body
LE: loop exit
PB: predicated region body
PF: predicated region fallthrough
CT: control target
= control target key end

     0   :  { %s1242_s1 = inlined_call_operand.vmem [shape: bf16[128,128], index: 1, kind: input, shape index: {}]   ;;  %s1243_s0 = inlined_call_operand.vmem [shape: bf16[128,128], index: 0, kind: input, shape index: {}]   ;;  %s1244_s2 = inlined_call_operand.vmem [shape: bf16[128,128], index: 2, kind: input, shape index: {}]   ;;  %s1245_s4 = inlined_call_operand.vmem [shape: bf16[128,128], index: 4, kind: input, shape index: {}]   ;;  %s1246_s3 = inlined_call_operand.vmem [shape: f32[1,128], index: 3, kind: input, shape index: {}]   ;;  %s1247_s5 = inlined_call_operand.vmem [shape: bf16[128,128], index: 5, kind: output, shape index: {}]  }
   0x1   :  { %v1057_v0 = vld [vmem:[%s1242_s1] sm:$0xff]   ;;  %v1058_v1 = vld [vmem:[%s1242_s1 + $0x8] sm:$0xff]   ;;  %v1059_v2 = vld [vmem:[%s1242_s1 + $0x10] sm:$0xff]  }
   0x2   :  { %945 = vmatprep.subr.bf16.mxu0 %v1057_v0  ;;  %v1060_v3 = vld [vmem:[%s1242_s1 + $0x18] sm:$0xff]   ;;  %v1065_v4 = vld [vmem:[%s1243_s0] sm:$0xff]   ;;  %v1062_v6 = vld [vmem:[%s1242_s1 + $0x28] sm:$0xff]  }
   0x3   :  { %946 = vmatpush3.bf16.msra.mxu0 %v1057_v0  ;;  %961 = vmatprep.mubr.bf16.mxu0 %v1065_v4  ;;  %v1061_v5 = vld [vmem:[%s1242_s1 + $0x20] sm:$0xff]   ;;  %v1074_v8 = vld [vmem:[%s1244_s2 + $0x8] sm:$0xff]   ;;  %v1063_v9 = vld [vmem:[%s1242_s1 + $0x30] sm:$0xff]  }
   0x4   :  { %947 = vmatprep.subr.bf16.mxu0 %v1058_v1  ;;  %v1073_v7 = vld [vmem:[%s1244_s2] sm:$0xff]   ;;  %v1075_v10 = vld [vmem:[%s1244_s2 + $0x10] sm:$0xff]   ;;  %v1064_v11 = vld [vmem:[%s1242_s1 + $0x38] sm:$0xff]  }
   0x5   :  { %977 = vmatprep.subr.bf16.mxu1 %v1073_v7  ;;  %v1076_v12 = vld [vmem:[%s1244_s2 + $0x18] sm:$0xff]   ;;  %v1077_v13 = vld [vmem:[%s1244_s2 + $0x20] sm:$0xff]   ;;  %v1066_v14 = vld [vmem:[%s1243_s0 + $0x8] sm:$0xff]  }
   0x6   :  { %978 = vmatpush3.bf16.msra.mxu1 %v1073_v7  ;;  %v1067_v15 = vld [vmem:[%s1243_s0 + $0x10] sm:$0xff]   ;;  %v1078_v16 = vld [vmem:[%s1244_s2 + $0x28] sm:$0xff]   ;;  %v1068_v18 = vld [vmem:[%s1243_s0 + $0x18] sm:$0xff]  }
   0x7   :  { %948 = vmatpush3.bf16.msra.mxu0 %v1058_v1  ;;  %979 = vmatprep.subr.bf16.mxu1 %v1074_v8  ;;  %v1079_v17 = vld [vmem:[%s1244_s2 + $0x30] sm:$0xff]   ;;  %v1069_v19 = vld [vmem:[%s1243_s0 + $0x20] sm:$0xff]   ;;  %v1070_v20 = vld [vmem:[%s1243_s0 + $0x28] sm:$0xff]  }
   0x8   :  { %949 = vmatprep.subr.bf16.mxu0 %v1059_v2  ;;  %v1071_v21 = vld [vmem:[%s1243_s0 + $0x30] sm:$0xff]   ;;  %v1072_v22 = vld [vmem:[%s1243_s0 + $0x38] sm:$0xff]   ;;  %v1081_v24 = vld [vmem:[%s1245_s4] sm:$0xff]  }
   0x9   :  { %v1080_v23 = vld [vmem:[%s1244_s2 + $0x38] sm:$0xff]   ;;  %v1082_v25 = vld [vmem:[%s1245_s4 + $0x8] sm:$0xff]   ;;  %v1083_v26 = vld [vmem:[%s1245_s4 + $0x10] sm:$0xff]  }
   0xa   :  { %980 = vmatpush3.bf16.msra.mxu1 %v1074_v8  ;;  %v1084_v27 = vld [vmem:[%s1245_s4 + $0x18] sm:$0xff]   ;;  %v1085_v28 = vld [vmem:[%s1245_s4 + $0x20] sm:$0xff]   ;;  %v1086_v29 = vld [vmem:[%s1245_s4 + $0x28] sm:$0xff]  }
   0xb   :  { %950 = vmatpush3.bf16.msra.mxu0 %v1059_v2  ;;  %981 = vmatprep.subr.bf16.mxu1 %v1075_v10  ;;  %v1087_v54 = vld [vmem:[%s1245_s4 + $0x30] sm:$0xff]   ;;  %v1088_v55 = vld [vmem:[%s1245_s4 + $0x38] sm:$0xff]   ;;  %v801_v56 = vld [vmem:[%s1246_s3] ss:$0 sm:$0xff] }
   0xc   :  { %951 = vmatprep.subr.bf16.mxu0 %v1060_v3 }
   0xe   :  { %982 = vmatpush3.bf16.msra.mxu1 %v1075_v10 }
   0xf   :  { %952 = vmatpush3.bf16.msra.mxu0 %v1060_v3  ;;  %983 = vmatprep.subr.bf16.mxu1 %v1076_v12 }
  0x10   :  { %953 = vmatprep.subr.bf16.mxu0 %v1061_v5 }
  0x12   :  { %984 = vmatpush3.bf16.msra.mxu1 %v1076_v12 }
  0x13   :  { %954 = vmatpush3.bf16.msra.mxu0 %v1061_v5  ;;  %985 = vmatprep.subr.bf16.mxu1 %v1077_v13 }
  0x14   :  { %955 = vmatprep.subr.bf16.mxu0 %v1062_v6 }
  0x16   :  { %986 = vmatpush3.bf16.msra.mxu1 %v1077_v13 }
  0x17   :  { %956 = vmatpush3.bf16.msra.mxu0 %v1062_v6  ;;  %987 = vmatprep.subr.bf16.mxu1 %v1078_v16 }
  0x18   :  { %957 = vmatprep.subr.bf16.mxu0 %v1063_v9 }
  0x1a   :  { %988 = vmatpush3.bf16.msra.mxu1 %v1078_v16 }
  0x1b   :  { %958 = vmatpush3.bf16.msra.mxu0 %v1063_v9  ;;  %989 = vmatprep.subr.bf16.mxu1 %v1079_v17 }
  0x1c   :  { %959 = vmatprep.subr.bf16.mxu0 %v1064_v11 }
  0x1e   :  { %990 = vmatpush3.bf16.msra.mxu1 %v1079_v17 }
  0x1f   :  { %960 = vmatpush3.bf16.msra.mxu0 %v1064_v11  ;;  %991 = vmatprep.subr.bf16.mxu1 %v1080_v23 }
  0x20   :  { %1009 = vmatprep.subr.bf16.mxu0 %v1081_v24 }
  0x22   :  { %962 = vmatmul.mubr.bf16.vlgmr.msra.gmra.mrb[0].mxu0 %v1066_v14  ;;  %992 = vmatpush3.bf16.msra.mxu1 %v1080_v23 }
  0x23   :  { %965 = vmatprep.mubr.bf16.mxu0 %v1067_v15  ;;  %1041 = vmatprep.subr.bf16.mxu1 %v1081_v24 }
  0x24   :  { %1010 = vmatpush3.bf16.msra.mxu0 %v1081_v24 }
  0x25   :  { %1011 = vmatprep.subr.bf16.mxu0 %v1082_v25 }
  0x28   :  { %1012 = vmatpush3.bf16.msra.mxu0 %v1082_v25 }
  0x29   :  { %1013 = vmatprep.subr.bf16.mxu0 %v1083_v26 }
  0x2a   :  { %966 = vmatmul.mubr.bf16.gmra.mrb[4].mxu0 %v1068_v18 }
  0x2b   :  { %969 = vmatprep.mubr.bf16.mxu0 %v1069_v19 }
  0x2c   :  { %1014 = vmatpush3.bf16.msra.mxu0 %v1083_v26 }
  0x2d   :  { %1015 = vmatprep.subr.bf16.mxu0 %v1084_v27 }
  0x30   :  { %1016 = vmatpush3.bf16.msra.mxu0 %v1084_v27 }
  0x31   :  { %1017 = vmatprep.subr.bf16.mxu0 %v1085_v28 }
  0x32   :  { %970 = vmatmul.mubr.bf16.gmra.mrb[8].mxu0 %v1070_v20 }
  0x33   :  { %973 = vmatprep.mubr.bf16.mxu0 %v1071_v21 }
  0x34   :  { %1018 = vmatpush3.bf16.msra.mxu0 %v1085_v28 }
  0x35   :  { %1019 = vmatprep.subr.bf16.mxu0 %v1086_v29 }
  0x38   :  { %1020 = vmatpush3.bf16.msra.mxu0 %v1086_v29 }
  0x39   :  { %1021 = vmatprep.subr.bf16.mxu0 %v1087_v54 }
  0x3a   :  { %974 = vmatmul.mubr.bf16.gmra.mrb[12].mxu0 %v1072_v22 }
  0x3c   :  { %1022 = vmatpush3.bf16.msra.mxu0 %v1087_v54 }
  0x3d   :  { %1023 = vmatprep.subr.bf16.mxu0 %v1088_v55 }
  0x40   :  { %1024 = vmatpush3.bf16.msra.mxu0 %v1088_v55 }
  0xf5   :  { %v963_v30 = vpop.f32.mrb[0].mxu0 }
  0xf6   :  { %v224_v31 = vpop.f32.mrb[1].mxu0 }
  0xf7   :  { %v964_v32 = vpop.f32.mrb[2].mxu0 }
  0xf8   :  { %v339_v33 = vpack.c.bf16 %v964_v32, %v963_v30  ;;  %v227_v34 = vpop.f32.mrb[3].mxu0 }
  0xf9   :  { %v338_v35 = vpack.c.bf16 %v227_v34, %v224_v31 }
  0xfb   :  { %993 = vmatprep.mubr.bf16.mxu1 %v338_v35 }
  0xfc   :  { %994 = vmatmul.mubr.bf16.vlgmr.msra.gmra.mrb[0].mxu1 %v339_v33 }
  0xfd   :  { %v967_v36 = vpop.f32.mrb[4].mxu0  ;;  %1049 = vmatpush3.bf16.msra.mxu1 %v1081_v24 }
  0xfe   :  { %v240_v37 = vpop.f32.mrb[5].mxu0  ;;  %1042 = vmatprep.subr.bf16.mxu1 %v1082_v25 }
  0xff   :  { %v968_v38 = vpop.f32.mrb[6].mxu0 }
 0x100   :  { %v341_v39 = vpack.c.bf16 %v968_v38, %v967_v36  ;;  %v243_v40 = vpop.f32.mrb[7].mxu0 }
 0x101   :  { %v340_v41 = vpack.c.bf16 %v243_v40, %v240_v37  ;;  %1050 = vmatpush3.bf16.msra.mxu1 %v1082_v25 }
 0x102   :  { %1043 = vmatprep.subr.bf16.mxu1 %v1083_v26 }
 0x103   :  { %997 = vmatprep.mubr.bf16.mxu1 %v340_v41 }
 0x104   :  { %998 = vmatmul.mubr.bf16.gmra.mrb[4].mxu1 %v341_v39 }
 0x105   :  { %v971_v42 = vpop.f32.mrb[8].mxu0  ;;  %1051 = vmatpush3.bf16.msra.mxu1 %v1083_v26 }
 0x106   :  { %v256_v43 = vpop.f32.mrb[9].mxu0  ;;  %1044 = vmatprep.subr.bf16.mxu1 %v1084_v27 }
 0x107   :  { %v972_v44 = vpop.f32.mrb[10].mxu0 }
 0x108   :  { %v343_v45 = vpack.c.bf16 %v972_v44, %v971_v42  ;;  %v259_v46 = vpop.f32.mrb[11].mxu0 }
 0x109   :  { %v342_v47 = vpack.c.bf16 %v259_v46, %v256_v43  ;;  %1052 = vmatpush3.bf16.msra.mxu1 %v1084_v27 }
 0x10a   :  { %1045 = vmatprep.subr.bf16.mxu1 %v1085_v28 }
 0x10b   :  { %1001 = vmatprep.mubr.bf16.mxu1 %v342_v47 }
 0x10c   :  { %1002 = vmatmul.mubr.bf16.gmra.mrb[8].mxu1 %v343_v45 }
 0x10d   :  { %v975_v48 = vpop.f32.mrb[12].mxu0  ;;  %1053 = vmatpush3.bf16.msra.mxu1 %v1085_v28 }
 0x10e   :  { %v272_v49 = vpop.f32.mrb[13].mxu0  ;;  %1046 = vmatprep.subr.bf16.mxu1 %v1086_v29 }
 0x10f   :  { %v976_v50 = vpop.f32.mrb[14].mxu0 }
 0x110   :  { %v345_v51 = vpack.c.bf16 %v976_v50, %v975_v48  ;;  %v275_v52 = vpop.f32.mrb[15].mxu0 }
 0x111   :  { %v344_v53 = vpack.c.bf16 %v275_v52, %v272_v49  ;;  %1054 = vmatpush3.bf16.msra.mxu1 %v1086_v29 }
 0x112   :  { %1047 = vmatprep.subr.bf16.mxu1 %v1087_v54 }
 0x113   :  { %1005 = vmatprep.mubr.bf16.mxu1 %v344_v53 }
 0x114   :  { %1006 = vmatmul.mubr.bf16.gmra.mrb[12].mxu1 %v345_v51 }
 0x115   :  { %1055 = vmatpush3.bf16.msra.mxu1 %v1087_v54 }
 0x116   :  { %1048 = vmatprep.subr.bf16.mxu1 %v1088_v55 }
 0x119   :  { %1056 = vmatpush3.bf16.msra.mxu1 %v1088_v55 }
 0x1cf   :  { %v995_v57 = vpop.f32.mrb[0].mxu1 }
 0x1d0   :  { %v460_v58 = vadd.f32 %v995_v57, %v801_v56  ;;  %v451_v59 = vpop.f32.mrb[1].mxu1 }
 0x1d1   :  { %v452_v60 = vadd.f32 %v801_v56, %v451_v59  ;;  %v996_v61 = vpop.f32.mrb[2].mxu1 }
 0x1d2   :  { %v463_v62 = vadd.f32 %v996_v61, %v801_v56  ;;  %v454_v63 = vpop.f32.mrb[3].mxu1  ;;  %v516_v1 = vmax.f32 %v460_v58, 0.0 }
 0x1d3   :  { %v455_v0 = vadd.f32 %v801_v56, %v454_v63  ;;  %v514_v3 = vmax.f32 %v452_v60, 0.0 }
 0x1d4   :  { %v517_v2 = vmax.f32 %v463_v62, 0.0 }
 0x1d5   :  { %v515_v4 = vmax.f32 %v455_v0, 0.0 }
 0x1d6   :  { %v531_v5 = vpack.c.bf16 %v517_v2, %v516_v1 }
 0x1d7   :  { %v530_v6 = vpack.c.bf16 %v515_v4, %v514_v3  ;;  %v999_v7 = vpop.f32.mrb[4].mxu1 }
 0x1d8   :  { %v476_v8 = vadd.f32 %v999_v7, %v801_v56  ;;  %v467_v9 = vpop.f32.mrb[5].mxu1 }
 0x1d9   :  { %v468_v10 = vadd.f32 %v801_v56, %v467_v9  ;;  %v1000_v11 = vpop.f32.mrb[6].mxu1  ;;  %1025 = vmatprep.mubr.bf16.mxu0 %v530_v6 }
 0x1da   :  { %v479_v12 = vadd.f32 %v1000_v11, %v801_v56  ;;  %v470_v13 = vpop.f32.mrb[7].mxu1  ;;  %1026 = vmatmul.mubr.bf16.vlgmr.msra.gmra.mrb[16].mxu0 %v531_v5  ;;  %v520_v15 = vmax.f32 %v476_v8, 0.0 }
 0x1db   :  { %v471_v14 = vadd.f32 %v801_v56, %v470_v13  ;;  %v518_v17 = vmax.f32 %v468_v10, 0.0 }
 0x1dc   :  { %v521_v16 = vmax.f32 %v479_v12, 0.0 }
 0x1dd   :  { %v519_v18 = vmax.f32 %v471_v14, 0.0 }
 0x1de   :  { %v533_v19 = vpack.c.bf16 %v521_v16, %v520_v15 }
 0x1df   :  { %v532_v20 = vpack.c.bf16 %v519_v18, %v518_v17  ;;  %v1003_v21 = vpop.f32.mrb[8].mxu1 }
 0x1e0   :  { %v492_v22 = vadd.f32 %v1003_v21, %v801_v56  ;;  %v483_v23 = vpop.f32.mrb[9].mxu1 }
 0x1e1   :  { %v484_v24 = vadd.f32 %v801_v56, %v483_v23  ;;  %v1004_v25 = vpop.f32.mrb[10].mxu1  ;;  %1029 = vmatprep.mubr.bf16.mxu0 %v532_v20 }
 0x1e2   :  { %v495_v26 = vadd.f32 %v1004_v25, %v801_v56  ;;  %v486_v27 = vpop.f32.mrb[11].mxu1  ;;  %1030 = vmatmul.mubr.bf16.gmra.mrb[20].mxu0 %v533_v19  ;;  %v524_v29 = vmax.f32 %v492_v22, 0.0 }
 0x1e3   :  { %v487_v28 = vadd.f32 %v801_v56, %v486_v27  ;;  %v522_v31 = vmax.f32 %v484_v24, 0.0 }
 0x1e4   :  { %v525_v30 = vmax.f32 %v495_v26, 0.0 }
 0x1e5   :  { %v523_v32 = vmax.f32 %v487_v28, 0.0 }
 0x1e6   :  { %v535_v33 = vpack.c.bf16 %v525_v30, %v524_v29 }
 0x1e7   :  { %v534_v34 = vpack.c.bf16 %v523_v32, %v522_v31  ;;  %v1007_v35 = vpop.f32.mrb[12].mxu1 }
 0x1e8   :  { %v508_v36 = vadd.f32 %v1007_v35, %v801_v56  ;;  %v499_v37 = vpop.f32.mrb[13].mxu1 }
 0x1e9   :  { %v500_v38 = vadd.f32 %v801_v56, %v499_v37  ;;  %v1008_v39 = vpop.f32.mrb[14].mxu1  ;;  %1033 = vmatprep.mubr.bf16.mxu1 %v534_v34 }
 0x1ea   :  { %v511_v40 = vadd.f32 %v1008_v39, %v801_v56  ;;  %v502_v41 = vpop.f32.mrb[15].mxu1  ;;  %1034 = vmatmul.mubr.bf16.vlgmr.msra.gmra.mrb[16].mxu1 %v535_v33  ;;  %v528_v43 = vmax.f32 %v508_v36, 0.0 }
 0x1eb   :  { %v503_v42 = vadd.f32 %v801_v56, %v502_v41  ;;  %v526_v45 = vmax.f32 %v500_v38, 0.0 }
 0x1ec   :  { %v529_v44 = vmax.f32 %v511_v40, 0.0 }
 0x1ed   :  { %v527_v46 = vmax.f32 %v503_v42, 0.0 }
 0x1ee   :  { %v537_v47 = vpack.c.bf16 %v529_v44, %v528_v43 }
 0x1ef   :  { %v536_v48 = vpack.c.bf16 %v527_v46, %v526_v45 }
 0x1f1   :  { %1037 = vmatprep.mubr.bf16.mxu1 %v536_v48 }
 0x1f2   :  { %1038 = vmatmul.mubr.bf16.gmra.mrb[20].mxu1 %v537_v47 }
 0x2ad   :  { %v1027_v49 = vpop.f32.mrb[16].mxu0 }
 0x2ae   :  { %v636_v50 = vpop.f32.mrb[17].mxu0 }
 0x2af   :  { %v1028_v51 = vpop.f32.mrb[18].mxu0 }
 0x2b0   :  { %v858_v52 = vpack.c.bf16 %v1028_v51, %v1027_v49  ;;  %v639_v53 = vpop.f32.mrb[19].mxu0 }
 0x2b1   :  { %v853_v54 = vpack.c.bf16 %v639_v53, %v636_v50 }
 0x2b2   :  { %890 = vst [vmem:[%s1247_s5 + $0x8] sm:$0xff] %v858_v52  }
 0x2b3   :  { %854 = vst [vmem:[%s1247_s5] sm:$0xff] %v853_v54  }
 0x2b5   :  { %v1031_v55 = vpop.f32.mrb[20].mxu0 }
 0x2b6   :  { %v652_v56 = vpop.f32.mrb[21].mxu0 }
 0x2b7   :  { %v1032_v57 = vpop.f32.mrb[22].mxu0 }
 0x2b8   :  { %v868_v58 = vpack.c.bf16 %v1032_v57, %v1031_v55  ;;  %v655_v59 = vpop.f32.mrb[23].mxu0 }
 0x2b9   :  { %v863_v60 = vpack.c.bf16 %v655_v59, %v652_v56 }
 0x2ba   :  { %892 = vst [vmem:[%s1247_s5 + $0x18] sm:$0xff] %v868_v58  }
 0x2bb   :  { %891 = vst [vmem:[%s1247_s5 + $0x10] sm:$0xff] %v863_v60  }
 0x2bd   :  { %v1035_v61 = vpop.f32.mrb[16].mxu1 }
 0x2be   :  { %v668_v62 = vpop.f32.mrb[17].mxu1 }
 0x2bf   :  { %v1036_v63 = vpop.f32.mrb[18].mxu1 }
 0x2c0   :  { %v878_v0 = vpack.c.bf16 %v1036_v63, %v1035_v61  ;;  %v671_v1 = vpop.f32.mrb[19].mxu1 }
 0x2c1   :  { %v873_v2 = vpack.c.bf16 %v671_v1, %v668_v62 }
 0x2c2   :  { %894 = vst [vmem:[%s1247_s5 + $0x28] sm:$0xff] %v878_v0  }
 0x2c3   :  { %893 = vst [vmem:[%s1247_s5 + $0x20] sm:$0xff] %v873_v2  }
 0x2c5   :  { %v1039_v3 = vpop.f32.mrb[20].mxu1 }
 0x2c6   :  { %v684_v4 = vpop.f32.mrb[21].mxu1 }
 0x2c7   :  { %v1040_v5 = vpop.f32.mrb[22].mxu1 }
 0x2c8   :  { %v888_v6 = vpack.c.bf16 %v1040_v5, %v1039_v3  ;;  %v687_v7 = vpop.f32.mrb[23].mxu1 }
 0x2c9   :  { %v883_v8 = vpack.c.bf16 %v687_v7, %v684_v4 }
 0x2ca   :  { %896 = vst [vmem:[%s1247_s5 + $0x38] sm:$0xff] %v888_v6  }
 0x2cb   :  { %895 = vst [vmem:[%s1247_s5 + $0x30] sm:$0xff] %v883_v8  }

</bundles_post_ra>
